<compile_context>
chip_gen: v7x
topology: tpu7x:2x2x1
jax: 0.10.0
libtpu: 0.0.40
codegen_flags: <defaults>
</compile_context>

<pallas_src>
import functools

import jax
import jax.numpy as jnp
from jax import lax
from jax.experimental import pallas as pl
from jax.experimental.pallas import tpu as pltpu


# Per-input-block VMEM budget.  Pallas double-buffers inputs, so the pipeline
# holds ~2x this; 4 MiB keeps us inside v5e's 16 MiB default scoped VMEM and
# v7x's 64 MiB physical VMEM.
_BLOCK_BUDGET_BYTES = 4 * 1024 * 1024


def _sublane_pack(itemsize):
    # Sub-32-bit dtypes pack along sublanes: 8 rows for 4B, 16 for 2B, 32 for 1B.
    return {4: 8, 2: 16, 1: 32}.get(itemsize, 8)


def _choose_tiles(N, C, S, itemsize):
    """Pick (tn, tc, ts) block dims for the flattened (N, C, S) input."""
    pack = _sublane_pack(itemsize)
    row_bytes = max(1, S * itemsize)        # one channel row
    slab_bytes = max(1, C * row_bytes)      # one full (C, S) image

    if slab_bytes <= _BLOCK_BUDGET_BYTES:
        # Whole (C, S) slab fits: batch several images per block to amortize
        # per-grid-step overhead (important for small final feature maps).
        tn = max(1, min(N, _BLOCK_BUDGET_BYTES // slab_bytes))
        if tn < N and tn >= 8:
            tn = (tn // 8) * 8  # sublane-friendly partial-batch block
        return tn, C, S

    # Tile channels.  Prefer multiples of 128 so the (tn, tc) output stores
    # stay lane-dense (unmasked vst); fall back to the sublane pack.
    max_rows = _BLOCK_BUDGET_BYTES // row_bytes
    if max_rows >= 128:
        tc = (max_rows // 128) * 128
    else:
        tc = max(pack, (max_rows // pack) * pack)
    tc = min(tc, C)
    if tc * row_bytes <= _BLOCK_BUDGET_BYTES:
        return 1, tc, S

    # Huge feature map: tile the spatial axis too (accumulator pattern).
    # Last spatial block may be partial; the kernel masks it.
    ts = max(128, (_BLOCK_BUDGET_BYTES // max(1, tc * itemsize)) // 128 * 128)
    ts = min(ts, S)
    return 1, tc, ts


def _gap_single_pass_kernel(x_ref, o_ref, *, inv_s):
    # x_ref: (tn, tc, S) input tile; o_ref: (tn, tc) output tile.
    acc = jnp.sum(x_ref[...], axis=-1, dtype=jnp.float32)
    o_ref[...] = (acc * inv_s).astype(o_ref.dtype)


def _gap_accum_kernel(x_ref, o_ref, acc_ref, *, inv_s, s_total, ts, needs_mask):
    # x_ref: (tn, tc, ts) input tile, o_ref: (tn, tc) output tile,
    # acc_ref: (tn, tc) f32 accumulator (persists across the spatial grid axis).
    s_idx = pl.program_id(2)

    @pl.when(s_idx == 0)
    def _():
        acc_ref[...] = jnp.zeros_like(acc_ref)

    x = x_ref[...]
    if needs_mask:
        lane = lax.broadcasted_iota(jnp.int32, x.shape, dimension=2)
        x = jnp.where(s_idx * ts + lane < s_total, x, jnp.zeros_like(x))
    acc_ref[...] += jnp.sum(x, axis=-1, dtype=jnp.float32)

    @pl.when(s_idx == pl.num_programs(2) - 1)
    def _():
        o_ref[...] = (acc_ref[...] * inv_s).astype(o_ref.dtype)


def global_avg_pool2d(x):
    """Pallas equivalent of nn.functional.avg_pool2d(x, kernel_size=x.shape[2:])."""
    N, C, H, W = x.shape
    S = H * W
    itemsize = jnp.dtype(x.dtype).itemsize
    tn, tc, ts = _choose_tiles(N, C, S, itemsize)

    # Flatten H, W into one lane-dense axis (free reshape for contiguous NCHW).
    x_flat = x.reshape(N, C, S)
    inv_s = 1.0 / float(S)

    cost = pl.CostEstimate(
        flops=N * C * S,  # ~one add per input element
        transcendentals=0,
        bytes_accessed=N * C * S * itemsize + N * C * itemsize,
    )

    if ts == S:
        # Common case: whole spatial extent in one block -> no scratch, no
        # accumulator, 2-D all-parallel grid (megacore friendly).
        grid = (pl.cdiv(N, tn), pl.cdiv(C, tc))
        out = pl.pallas_call(
            functools.partial(_gap_single_pass_kernel, inv_s=inv_s),
            out_shape=jax.ShapeDtypeStruct((N, C), x.dtype),
            grid_spec=pltpu.PrefetchScalarGridSpec(
                num_scalar_prefetch=0,
                grid=grid,
                in_specs=[pl.BlockSpec((tn, tc, S), lambda n, c: (n, c, 0))],
                out_specs=pl.BlockSpec((tn, tc), lambda n, c: (n, c)),
            ),
            compiler_params=pltpu.CompilerParams(
                dimension_semantics=("parallel", "parallel"),
            ),
            cost_estimate=cost,
        )(x_flat)
    else:
        # Very large feature map: reduce across spatial blocks with an f32
        # accumulator; last (partial) spatial block is masked in-kernel.
        needs_mask = (S % ts) != 0
        grid = (pl.cdiv(N, tn), pl.cdiv(C, tc), pl.cdiv(S, ts))
        out = pl.pallas_call(
            functools.partial(
                _gap_accum_kernel,
                inv_s=inv_s,
                s_total=S,
                ts=ts,
                needs_mask=needs_mask,
            ),
            out_shape=jax.ShapeDtypeStruct((N, C), x.dtype),
            grid_spec=pltpu.PrefetchScalarGridSpec(
                num_scalar_prefetch=0,
                grid=grid,
                in_specs=[pl.BlockSpec((tn, tc, ts), lambda n, c, s: (n, c, s))],
                out_specs=pl.BlockSpec((tn, tc), lambda n, c, s: (n, c)),
                scratch_shapes=[pltpu.VMEM((tn, tc), jnp.float32)],
            ),
            compiler_params=pltpu.CompilerParams(
                dimension_semantics=("parallel", "parallel", "arbitrary"),
            ),
            cost_estimate=cost,
        )(x_flat)

    # Lane-dense (N, C) result -> PyTorch-shaped (N, C, 1, 1).
    return out.reshape(N, C, 1, 1)


if __name__ == "__main__":
    key = jax.random.PRNGKey(0)
    N, C, H, W = 2, 4, 16, 16
    x = jax.random.normal(key, (N, C, H, W), dtype=jnp.float32)

    out = global_avg_pool2d(x)
    out = jax.block_until_ready(out)

    # Reference check (pure JAX).
    ref = jnp.mean(x, axis=(2, 3), keepdims=True)
    assert out.shape == (N, C, 1, 1), out.shape
    assert out.dtype == x.dtype, out.dtype
    assert jnp.allclose(out, ref, atol=1e-5, rtol=1e-5), "mismatch vs reference"

    print("KERNEL_OK")
</pallas_src>

<mosaic_0001>
module attributes {stable_mosaic.version = 11 : i64} {
  func.func @_gap_single_pass_kernel(%arg0: i32, %arg1: i32, %arg2: memref<2x4x256xf32, #tpu.memory_space<vmem>>, %arg3: memref<2x4xf32, #tpu.memory_space<vmem>>) attributes {dimension_semantics = [#tpu.dimension_semantics<parallel>, #tpu.dimension_semantics<parallel>], iteration_bounds = array<i64: 1, 1>, scalar_prefetch = 0 : i64, scratch_operands = 0 : i64, tpu.core_type = #tpu.core_type<tc>, window_params = [{transform_indices = @transform_0, window_bounds = array<i64: 2, 4, 256>}, {transform_indices = @transform_1, window_bounds = array<i64: 2, 4>}]} {
    %c0 = arith.constant 0 : index
    %c0_0 = arith.constant 0 : index
    %c0_1 = arith.constant 0 : index
    %0 = vector.load %arg2[%c0, %c0_0, %c0_1] : memref<2x4x256xf32, #tpu.memory_space<vmem>>, vector<2x4x256xf32>
    %cst = arith.constant dense<0.000000e+00> : vector<2x4xf32>
    %1 = vector.multi_reduction <add>, %0, %cst [2] : vector<2x4x256xf32> to vector<2x4xf32>
    %cst_2 = arith.constant 3.906250e-03 : f32
    %2 = vector.broadcast %cst_2 : f32 to vector<2x4xf32>
    %3 = arith.mulf %1, %2 : vector<2x4xf32>
    %c0_3 = arith.constant 0 : index
    %c0_4 = arith.constant 0 : index
    %4 = vector.load %arg3[%c0_3, %c0_4] : memref<2x4xf32, #tpu.memory_space<vmem>>, vector<2x4xf32>
    tpu.vector_store %arg3[%c0_3, %c0_4], %3 {strides = array<i32>} : memref<2x4xf32, #tpu.memory_space<vmem>>, vector<2x4xf32>,
    return
  }
  func.func @transform_0(%arg0: i32, %arg1: i32) -> (i32, i32, i32) {
    %c0_i32 = arith.constant 0 : i32
    %c0_i32_0 = arith.constant 0 : i32
    return %arg0, %arg1, %c0_i32 : i32, i32, i32
  }
  func.func @transform_1(%arg0: i32, %arg1: i32) -> (i32, i32) {
    %c0_i32 = arith.constant 0 : i32
    return %arg0, %arg1 : i32, i32
  }
}

</mosaic_0001>

<bundles_post_ra>
// kernel: tpu_custom_call.1
= control target key start
LH: loop header
LB: loop body
LE: loop exit
PB: predicated region body
PF: predicated region fallthrough
CT: control target
= control target key end

     0   :  { %6 = vsyncpa [#allocation3], 0  ;;  %s168_s0 = inlined_call_operand.hbm [shape: f32[2,4,256], index: 0, kind: input, shape index: {}]   ;;  %s169_s1 = inlined_call_operand.hbm [shape: f32[2,4], index: 1, kind: output, shape index: {}]  }
   0x1   :  { %7 = vsyncpa [#allocation4], 0  ;;  %s130_s6 = smov [#allocation2]   ;;  %s82_s10 = scalar_lea.hbm %s168_s0, 256 }
   0x2   :  { %s13_s7 = sshll.u32 %s130_s6, 4  ;;  %p83_p0 = scmp.ne.s32.totalorder %s168_s0, %s82_s10  ;;  %s14_s7 = int_to_ptr.vmem [resolvable:$true] %s13_s7 }
   0x3   :  { %p86_p1 = scmp.lt.u32.totalorder %s82_s10, %s168_s0 }
   0x5   :  { %p88_p2 = pnand %p86_p1, %p83_p0 }
   0x7   :  { %91 = shalt.err (!%p88_p2)
}
   0x8   :  { %s92_s15 = scalar_lea.vmem %s14_s7, 256  ;;  %p97_p4 = scmp.lt.s32.totalorder %s14_s7, %s14_s7 }
   0x9   :  { %p93_p3 = scmp.ne.s32.totalorder %s14_s7, %s92_s15  ;;  %p98_p5 = scmp.lt.s32.totalorder %s92_s15, %s92_s15 }
   0xb   :  { %p99_p6 = por %p98_p5, %p97_p4 }
   0xd   :  { %p100_p7 = pnand %p99_p6, %p93_p3 }
   0xf   :  { %103 = shalt.err (!%p100_p7)
}
  0x10   :  { %s131_s16 = smov 128   ;;  %s132_s17 = smov 8  }
  0x11   :  { %19 = dma.hbm_to_vmem [thread:$0]  %s168_s0, 256, %s14_s7, [#allocation3], %s131_s16, %s131_s16, %s132_s17  }
  0x12   :  { %126 = dma.done.wait [#allocation3], 256  }
  0x13   :  { %127 = vsyncadd [#allocation3], 4294967040  ;;  %vm31_vm0 = vcmask 1043456   ;;  %v23_v0 = vld [vmem:[#allocation2] sm:$0xff]  ;;  %v24_v1 = vld [vmem:[#allocation2 + $0x8] sm:$0xff]  ;;  %v46_v10 = vlaneseq  ;;  %s133_s0 = smov [#allocation5]  }
  0x14   :  { %v27_v2 = vcombine.high %v23_v0, %v23_v0  ;;  %v32_v3 = vsel %vm31_vm0, %v23_v0, 0.0  ;;  %v28_v4 = vcombine.high %v24_v1, %v24_v1  ;;  %v37_v6 = vsel %vm31_vm0, %v24_v1, 0.0  ;;  %s67_s20 = sshll.u32 %s133_s0, 4  ;;  %s68_s20 = int_to_ptr.vmem [resolvable:$true] %s67_s20 }
  0x15   :  { %v47_v11 = vand.u32 127, %v46_v10  ;;  %v49_v12 = vshrl.u32 %v46_v10, 7  ;;  %vm56_vm1 = vcmask 1041409   ;;  %vm59_vm2 = vcmask 25600   ;;  %s104_s21 = scalar_lea.vmem %s68_s20, 32  ;;  %p109_p9 = scmp.lt.s32.totalorder %s68_s20, %s68_s20 }
  0x16   :  { %v33_v5 = vsel %vm31_vm0, %v27_v2, 0.0  ;;  %v38_v7 = vsel %vm31_vm0, %v28_v4, 0.0  ;;  %p105_p8 = scmp.ne.s32.totalorder %s68_s20, %s104_s21  ;;  %p110_p10 = scmp.lt.s32.totalorder %s104_s21, %s104_s21 }
  0x17   :  { %v34_v8 = vadd.f32 %v33_v5, %v32_v3  ;;  %v39_v9 = vadd.f32 %v38_v7, %v37_v6  ;;  %v50_v14 = vsub.s32 %v47_v11, %v49_v12 }
  0x18   :  { %p111_p11 = por %p110_p10, %p109_p9 }
  0x19   :  { %35 = vadd.xlane.f32.xlu0 %v34_v8 }
  0x1a   :  { %p112_p12 = pnand %p111_p11, %p105_p8 }
  0x1d   :  { %40 = vadd.xlane.f32.xlu0 %v39_v9 }
  0xa6   :  { %v36_v13 = vpop.xlane.xlu0 %35 }
  0xa7   :  { %v42_v15 = vmul.f32 0.00390625, %v36_v13 }
  0xa9   :  { %v51_v18 = vrot.slane %v42_v15, %v50_v14 }
  0xaa   :  { %v41_v16 = vpop.xlane.xlu0 %40 }
  0xab   :  { %v43_v17 = vmul.f32 0.00390625, %v41_v16 }
  0xad   :  { %v55_v19 = vrot.slane %v43_v17, %v50_v14 }
  0xaf   :  { %v57_v20 = vsel %vm56_vm1, %v55_v19, %v51_v18 }
  0xb0   :  { %60 = vst.msk [vmem:[#allocation5] sm:$0x3] %vm59_vm2, %v57_v20 }
  0xb1   :  { %115 = shalt.err (!%p112_p12)
}
  0xb2   :  { %s116_s24 = scalar_lea.hbm %s169_s1, 32 }
  0xb3   :  { %p117_p13 = scmp.ne.s32.totalorder %s169_s1, %s116_s24  ;;  %p120_p0 = scmp.lt.u32.totalorder %s116_s24, %s169_s1 }
  0xb5   :  { %p122_p1 = pnand %p120_p0, %p117_p13 }
  0xb7   :  { %125 = shalt.err (!%p122_p1)
}
  0xb8   :  { %70 = dma.vmem_to_hbm [thread:$0]  %s68_s20, 32, %s169_s1, [#allocation4]  }
  0xb9   :  { %128 = dma.done.wait [#allocation4], 32  }
  0xba   :  { %129 = vsyncadd [#allocation4], 4294967264 }
  0xbb   :  { %74 = vsyncpa [#allocation3], 1 }
  0xbc   :  { %75 = vsyncpa [#allocation4], 1 }

</bundles_post_ra>
